<compile_context>
chip_gen: v5e
topology: v5e:2x2
jax: 0.10.0
libtpu: 0.0.40
codegen_flags: <defaults>
</compile_context>

<pallas_src>
import jax
import jax.numpy as jnp
from jax import lax
from jax.experimental import pallas as pl
from jax.experimental.pallas import tpu as pltpu


# ----------------------------------------------------------------------------
# Fused kernel: masked BN + graph-layer stack + mixture heads + mean/std.
# One batch element per grid step (grid axis is "parallel" for v7x megacore).
# ----------------------------------------------------------------------------
def make_fused_kernel(layer_n, mixture_n, out_dim, out_scale, resnet,
                      negative_slope=0.01):
    def kernel(*refs):
        (x_ref, adj_ref, mask_ref,
         gamma_ref, beta_ref, mean_ref, var_ref) = refs[:7]
        gml_refs = refs[7:7 + 2 * layer_n]
        w_mix_ref = refs[7 + 2 * layer_n]
        b_mix_ref = refs[8 + 2 * layer_n]
        out_ref = refs[9 + 2 * layer_n]

        x = x_ref[0]                      # (N, F)
        adj = adj_ref[0]                  # (N, N)
        mask = mask_ref[0]                # (N, 1)

        # --- MaskedBatchNorm1d (eval) fused into the layer stack input ------
        inv = lax.rsqrt(var_ref[...] + 1e-5)                 # (1, F)
        h = ((x - mean_ref[...]) * inv * gamma_ref[...] + beta_ref[...]) * mask

        # --- GraphMatLayers / GraphMatLayerFast stack (GS == 1) -------------
        for li in range(layer_n):                            # static unroll
            w = gml_refs[2 * li][...]                        # (C, D)
            b = gml_refs[2 * li + 1][...]                    # (1, D)
            t = jnp.dot(h, w, preferred_element_type=jnp.float32) + b
            t = jnp.dot(adj, t, preferred_element_type=jnp.float32)
            t = jnp.where(t > 0, t, negative_slope * t)      # LeakyReLU
            if resnet and (t.shape[-1] == h.shape[-1]):      # static resnet skip
                t = t + h
            h = t

        # --- mixture heads: one lane-dense matmul over all heads ------------
        y_all = jnp.dot(h, w_mix_ref[...], preferred_element_type=jnp.float32)
        y_all = (y_all + b_mix_ref[...]) * out_scale         # (N, M*OUT)

        # mean over heads (eval path) from static lane slices
        mu = y_all[:, 0:out_dim]
        for m in range(1, mixture_n):
            mu = mu + y_all[:, m * out_dim:(m + 1) * out_dim]
        mu = mu * (1.0 / mixture_n)

        # unbiased variance over heads (matches torch.var for mixture_n >= 2;
        # guarded against divide-by-zero when mixture_n == 1)
        var = jnp.zeros_like(mu)
        for m in range(mixture_n):
            d = y_all[:, m * out_dim:(m + 1) * out_dim] - mu
            var = var + d * d
        var = var * (1.0 / max(mixture_n - 1, 1))
        std = jnp.sqrt(var + 1e-5)

        # single packed store: [mu | std] along the lane axis
        out_ref[0] = jnp.concatenate([mu, std], axis=-1)

    return kernel


def ve_bootstrap_forward(params, adj, vect_feat, input_mask, input_idx=None,
                         adj_oh=None, *, out_scale=1.0, resnet=True):
    """Eval-mode forward. adj: (B, GS=1, N, N); vect_feat: (B, N, F);
    input_mask: (B, N). Returns {'mu': (B,N,OUT), 'std': (B,N,OUT)}."""
    del input_idx, adj_oh                                    # unused on eval path
    B, N, F = vect_feat.shape
    adj_sq = adj[:, 0]                                       # (B, N, N), GS == 1
    mask3 = input_mask.reshape(B, N, 1).astype(jnp.float32)

    bn = params["bn"]
    gml = params["gml"]                                      # list of (w, b)
    w_mix, b_mix = params["mix"]                             # (M, D, OUT), (M, OUT)
    M, D, OUT = w_mix.shape
    layer_n = len(gml)

    # Pack all heads into one matmul operand: W_all[:, m*OUT+o] = w_mix[m,:,o].
    w_mix_all = jnp.transpose(w_mix, (1, 0, 2)).reshape(D, M * OUT)
    b_mix_all = b_mix.reshape(1, M * OUT)

    inputs = [vect_feat, adj_sq, mask3,
              bn["gamma"], bn["beta"], bn["running_mean"], bn["running_var"]]
    in_specs = [
        pl.BlockSpec((1, N, F), lambda b: (b, 0, 0)),
        pl.BlockSpec((1, N, N), lambda b: (b, 0, 0)),
        pl.BlockSpec((1, N, 1), lambda b: (b, 0, 0)),
        pl.BlockSpec((1, F), lambda b: (0, 0)),
        pl.BlockSpec((1, F), lambda b: (0, 0)),
        pl.BlockSpec((1, F), lambda b: (0, 0)),
        pl.BlockSpec((1, F), lambda b: (0, 0)),
    ]
    for w, bb in gml:                                        # constant blocks
        inputs += [w, bb]
        in_specs += [pl.BlockSpec(w.shape, lambda b: (0, 0)),
                     pl.BlockSpec(bb.shape, lambda b: (0, 0))]
    inputs += [w_mix_all, b_mix_all]
    in_specs += [pl.BlockSpec((D, M * OUT), lambda b: (0, 0)),
                 pl.BlockSpec((1, M * OUT), lambda b: (0, 0))]

    kern = make_fused_kernel(layer_n, M, OUT, out_scale, resnet)

    packed = pl.pallas_call(
        kern,
        out_shape=jax.ShapeDtypeStruct((B, N, 2 * OUT), jnp.float32),
        grid=(B,),
        in_specs=in_specs,
        out_specs=pl.BlockSpec((1, N, 2 * OUT), lambda b: (b, 0, 0)),
        compiler_params=pltpu.CompilerParams(
            dimension_semantics=("parallel",)),
    )(*inputs)

    return {"mu": packed[..., :OUT], "std": packed[..., OUT:]}


# ----------------------------------------------------------------------------
# Parameter init (deterministic synthetic; no checkpoint load)
# ----------------------------------------------------------------------------
def init_ve_bootstrap_params(key, g_feature_n, int_d, layer_n, mixture_n,
                             out_dim):
    scale = 0.1
    keys = jax.random.split(key, 2 * layer_n + 2 * mixture_n)
    params = {"gml": [], "mix": []}
    in_d = g_feature_n
    for li in range(layer_n):
        w = scale * jax.random.normal(keys[2 * li], (in_d, int_d), jnp.float32)
        b = scale * jax.random.normal(keys[2 * li + 1], (1, int_d), jnp.float32)
        params["gml"].append((w, b))
        in_d = int_d
    w_mix, b_mix = [], []
    for m in range(mixture_n):
        w_mix.append(scale * jax.random.normal(
            keys[2 * layer_n + 2 * m], (int_d, out_dim), jnp.float32))
        b_mix.append(scale * jax.random.normal(
            keys[2 * layer_n + 2 * m + 1], (out_dim,), jnp.float32))
    params["mix"] = (jnp.stack(w_mix, 0), jnp.stack(b_mix, 0))
    params["bn"] = dict(
        gamma=jnp.ones((1, g_feature_n), jnp.float32),
        beta=jnp.zeros((1, g_feature_n), jnp.float32),
        running_mean=jnp.zeros((1, g_feature_n), jnp.float32),
        running_var=jnp.ones((1, g_feature_n), jnp.float32),
    )
    return params


if __name__ == "__main__":
    BATCH_N, MAX_N, F_N = 2, 16, 16
    INT_D, LAYER_N, MIXTURE_N, OUT_DIM, GS = 32, 3, 5, 1, 1

    key = jax.random.PRNGKey(0)
    k_adj, k_feat, k_param = jax.random.split(key, 3)

    # Symmetric, row-normalized random adjacency with self loops.
    a = jax.random.uniform(k_adj, (BATCH_N, MAX_N, MAX_N), jnp.float32)
    a = (a + jnp.swapaxes(a, -1, -2)) * 0.5
    a = a + jnp.eye(MAX_N, dtype=jnp.float32)[None]
    a = a / jnp.sum(a, axis=-1, keepdims=True)
    adj = a.reshape(BATCH_N, GS, MAX_N, MAX_N)

    vect_feat = jax.random.normal(k_feat, (BATCH_N, MAX_N, F_N), jnp.float32)
    # valid-node mask: first 12 nodes valid in batch 0, first 10 in batch 1
    input_mask = jnp.stack([
        (jnp.arange(MAX_N) < 12).astype(jnp.float32),
        (jnp.arange(MAX_N) < 10).astype(jnp.float32),
    ], axis=0)
    input_idx = jnp.arange(BATCH_N, dtype=jnp.int32)
    adj_oh = adj  # unused in forward

    params = init_ve_bootstrap_params(k_param, F_N, INT_D, LAYER_N,
                                      MIXTURE_N, OUT_DIM)

    out = ve_bootstrap_forward(params, adj, vect_feat, input_mask,
                               input_idx, adj_oh, out_scale=1.0, resnet=True)
    jax.block_until_ready(out)

    assert out["mu"].shape == (BATCH_N, MAX_N, OUT_DIM)
    assert out["std"].shape == (BATCH_N, MAX_N, OUT_DIM)
    assert bool(jnp.all(jnp.isfinite(out["mu"])))
    assert bool(jnp.all(out["std"] > 0.0))
    print("KERNEL_OK")
</pallas_src>

<mosaic_0001>
module attributes {stable_mosaic.version = 11 : i64} {
  func.func @kernel(%arg0: i32, %arg1: memref<1x16x16xf32, #tpu.memory_space<vmem>>, %arg2: memref<1x16x16xf32, #tpu.memory_space<vmem>>, %arg3: memref<1x16x1xf32, #tpu.memory_space<vmem>>, %arg4: memref<1x16xf32, #tpu.memory_space<vmem>>, %arg5: memref<1x16xf32, #tpu.memory_space<vmem>>, %arg6: memref<1x16xf32, #tpu.memory_space<vmem>>, %arg7: memref<1x16xf32, #tpu.memory_space<vmem>>, %arg8: memref<16x32xf32, #tpu.memory_space<vmem>>, %arg9: memref<1x32xf32, #tpu.memory_space<vmem>>, %arg10: memref<32x32xf32, #tpu.memory_space<vmem>>, %arg11: memref<1x32xf32, #tpu.memory_space<vmem>>, %arg12: memref<32x32xf32, #tpu.memory_space<vmem>>, %arg13: memref<1x32xf32, #tpu.memory_space<vmem>>, %arg14: memref<32x5xf32, #tpu.memory_space<vmem>>, %arg15: memref<1x5xf32, #tpu.memory_space<vmem>>, %arg16: memref<1x16x2xf32, #tpu.memory_space<vmem>>) attributes {dimension_semantics = [#tpu.dimension_semantics<parallel>], iteration_bounds = array<i64: 2>, scalar_prefetch = 0 : i64, scratch_operands = 0 : i64, tpu.core_type = #tpu.core_type<tc>, window_params = [{transform_indices = @transform_0, window_bounds = array<i64: 1, 16, 16>}, {transform_indices = @transform_1, window_bounds = array<i64: 1, 16, 16>}, {transform_indices = @transform_2, window_bounds = array<i64: 1, 16, 1>}, {pipeline_mode = #tpu.pipeline_mode<synchronous>, transform_indices = @transform_3, window_bounds = array<i64: 1, 16>}, {pipeline_mode = #tpu.pipeline_mode<synchronous>, transform_indices = @transform_4, window_bounds = array<i64: 1, 16>}, {pipeline_mode = #tpu.pipeline_mode<synchronous>, transform_indices = @transform_5, window_bounds = array<i64: 1, 16>}, {pipeline_mode = #tpu.pipeline_mode<synchronous>, transform_indices = @transform_6, window_bounds = array<i64: 1, 16>}, {pipeline_mode = #tpu.pipeline_mode<synchronous>, transform_indices = @transform_7, window_bounds = array<i64: 16, 32>}, {pipeline_mode = #tpu.pipeline_mode<synchronous>, transform_indices = @transform_8, window_bounds = array<i64: 1, 32>}, {pipeline_mode = #tpu.pipeline_mode<synchronous>, transform_indices = @transform_9, window_bounds = array<i64: 32, 32>}, {pipeline_mode = #tpu.pipeline_mode<synchronous>, transform_indices = @transform_10, window_bounds = array<i64: 1, 32>}, {pipeline_mode = #tpu.pipeline_mode<synchronous>, transform_indices = @transform_11, window_bounds = array<i64: 32, 32>}, {pipeline_mode = #tpu.pipeline_mode<synchronous>, transform_indices = @transform_12, window_bounds = array<i64: 1, 32>}, {pipeline_mode = #tpu.pipeline_mode<synchronous>, transform_indices = @transform_13, window_bounds = array<i64: 32, 5>}, {pipeline_mode = #tpu.pipeline_mode<synchronous>, transform_indices = @transform_14, window_bounds = array<i64: 1, 5>}, {transform_indices = @transform_15, window_bounds = array<i64: 1, 16, 2>}]} {
    %c0 = arith.constant 0 : index
    %c0_0 = arith.constant 0 : index
    %c0_1 = arith.constant 0 : index
    %0 = vector.load %arg1[%c0, %c0_0, %c0_1] : memref<1x16x16xf32, #tpu.memory_space<vmem>>, vector<1x16x16xf32>
    %1 = vector.shape_cast %0 : vector<1x16x16xf32> to vector<16x16xf32>
    %c0_2 = arith.constant 0 : index
    %c0_3 = arith.constant 0 : index
    %c0_4 = arith.constant 0 : index
    %2 = vector.load %arg2[%c0_2, %c0_3, %c0_4] : memref<1x16x16xf32, #tpu.memory_space<vmem>>, vector<1x16x16xf32>
    %3 = vector.shape_cast %2 : vector<1x16x16xf32> to vector<16x16xf32>
    %c0_5 = arith.constant 0 : index
    %c0_6 = arith.constant 0 : index
    %c0_7 = arith.constant 0 : index
    %4 = vector.load %arg3[%c0_5, %c0_6, %c0_7] : memref<1x16x1xf32, #tpu.memory_space<vmem>>, vector<1x16x1xf32>
    %5 = vector.shape_cast %4 : vector<1x16x1xf32> to vector<16x1xf32>
    %c0_8 = arith.constant 0 : index
    %c0_9 = arith.constant 0 : index
    %6 = vector.load %arg7[%c0_8, %c0_9] : memref<1x16xf32, #tpu.memory_space<vmem>>, vector<1x16xf32>
    %cst = arith.constant 9.99999974E-6 : f32
    %7 = vector.broadcast %cst : f32 to vector<1x16xf32>
    %8 = arith.addf %6, %7 : vector<1x16xf32>
    %9 = math.rsqrt %8 : vector<1x16xf32>
    %c0_10 = arith.constant 0 : index
    %c0_11 = arith.constant 0 : index
    %10 = vector.load %arg6[%c0_10, %c0_11] : memref<1x16xf32, #tpu.memory_space<vmem>>, vector<1x16xf32>
    %11 = vector.broadcast %10 : vector<1x16xf32> to vector<16x16xf32>
    %12 = arith.subf %1, %11 : vector<16x16xf32>
    %13 = vector.broadcast %9 : vector<1x16xf32> to vector<16x16xf32>
    %14 = arith.mulf %12, %13 : vector<16x16xf32>
    %c0_12 = arith.constant 0 : index
    %c0_13 = arith.constant 0 : index
    %15 = vector.load %arg4[%c0_12, %c0_13] : memref<1x16xf32, #tpu.memory_space<vmem>>, vector<1x16xf32>
    %16 = vector.broadcast %15 : vector<1x16xf32> to vector<16x16xf32>
    %17 = arith.mulf %14, %16 : vector<16x16xf32>
    %c0_14 = arith.constant 0 : index
    %c0_15 = arith.constant 0 : index
    %18 = vector.load %arg5[%c0_14, %c0_15] : memref<1x16xf32, #tpu.memory_space<vmem>>, vector<1x16xf32>
    %19 = vector.broadcast %18 : vector<1x16xf32> to vector<16x16xf32>
    %20 = arith.addf %17, %19 : vector<16x16xf32>
    %21 = vector.broadcast %5 : vector<16x1xf32> to vector<16x16xf32>
    %22 = arith.mulf %20, %21 : vector<16x16xf32>
    %c0_16 = arith.constant 0 : index
    %c0_17 = arith.constant 0 : index
    %23 = vector.load %arg8[%c0_16, %c0_17] : memref<16x32xf32, #tpu.memory_space<vmem>>, vector<16x32xf32>
    %c0_18 = arith.constant 0 : index
    %c0_19 = arith.constant 0 : index
    %24 = vector.load %arg9[%c0_18, %c0_19] : memref<1x32xf32, #tpu.memory_space<vmem>>, vector<1x32xf32>
    %cst_20 = arith.constant dense<0.000000e+00> : vector<16x32xf32>
    %25 = tpu.matmul %22, %23, %cst_20 {dimension_numbers = #tpu.dot_dimension_numbers<[1], [0], [0], [1], [0, 0, 1, 1], [], []>} : vector<16x16xf32>, vector<16x32xf32>, vector<16x32xf32> -> vector<16x32xf32>
    %26 = vector.broadcast %24 : vector<1x32xf32> to vector<16x32xf32>
    %27 = arith.addf %25, %26 : vector<16x32xf32>
    %cst_21 = arith.constant dense<0.000000e+00> : vector<16x32xf32>
    %28 = tpu.matmul %3, %27, %cst_21 {dimension_numbers = #tpu.dot_dimension_numbers<[1], [0], [0], [1], [0, 0, 1, 1], [], []>} : vector<16x16xf32>, vector<16x32xf32>, vector<16x32xf32> -> vector<16x32xf32>
    %cst_22 = arith.constant 0.000000e+00 : f32
    %29 = vector.broadcast %cst_22 : f32 to vector<16x32xf32>
    %30 = arith.cmpf ogt, %28, %29 : vector<16x32xf32>
    %cst_23 = arith.constant 0.00999999977 : f32
    %31 = vector.broadcast %cst_23 : f32 to vector<16x32xf32>
    %32 = arith.mulf %31, %28 : vector<16x32xf32>
    %33 = arith.select %30, %28, %32 : vector<16x32xi1>, vector<16x32xf32>
    %c0_24 = arith.constant 0 : index
    %c0_25 = arith.constant 0 : index
    %34 = vector.load %arg10[%c0_24, %c0_25] : memref<32x32xf32, #tpu.memory_space<vmem>>, vector<32x32xf32>
    %c0_26 = arith.constant 0 : index
    %c0_27 = arith.constant 0 : index
    %35 = vector.load %arg11[%c0_26, %c0_27] : memref<1x32xf32, #tpu.memory_space<vmem>>, vector<1x32xf32>
    %cst_28 = arith.constant dense<0.000000e+00> : vector<16x32xf32>
    %36 = tpu.matmul %33, %34, %cst_28 {dimension_numbers = #tpu.dot_dimension_numbers<[1], [0], [0], [1], [0, 0, 1, 1], [], []>} : vector<16x32xf32>, vector<32x32xf32>, vector<16x32xf32> -> vector<16x32xf32>
    %37 = vector.broadcast %35 : vector<1x32xf32> to vector<16x32xf32>
    %38 = arith.addf %36, %37 : vector<16x32xf32>
    %cst_29 = arith.constant dense<0.000000e+00> : vector<16x32xf32>
    %39 = tpu.matmul %3, %38, %cst_29 {dimension_numbers = #tpu.dot_dimension_numbers<[1], [0], [0], [1], [0, 0, 1, 1], [], []>} : vector<16x16xf32>, vector<16x32xf32>, vector<16x32xf32> -> vector<16x32xf32>
    %cst_30 = arith.constant 0.000000e+00 : f32
    %40 = vector.broadcast %cst_30 : f32 to vector<16x32xf32>
    %41 = arith.cmpf ogt, %39, %40 : vector<16x32xf32>
    %cst_31 = arith.constant 0.00999999977 : f32
    %42 = vector.broadcast %cst_31 : f32 to vector<16x32xf32>
    %43 = arith.mulf %42, %39 : vector<16x32xf32>
    %44 = arith.select %41, %39, %43 : vector<16x32xi1>, vector<16x32xf32>
    %45 = arith.addf %44, %33 : vector<16x32xf32>
    %c0_32 = arith.constant 0 : index
    %c0_33 = arith.constant 0 : index
    %46 = vector.load %arg12[%c0_32, %c0_33] : memref<32x32xf32, #tpu.memory_space<vmem>>, vector<32x32xf32>
    %c0_34 = arith.constant 0 : index
    %c0_35 = arith.constant 0 : index
    %47 = vector.load %arg13[%c0_34, %c0_35] : memref<1x32xf32, #tpu.memory_space<vmem>>, vector<1x32xf32>
    %cst_36 = arith.constant dense<0.000000e+00> : vector<16x32xf32>
    %48 = tpu.matmul %45, %46, %cst_36 {dimension_numbers = #tpu.dot_dimension_numbers<[1], [0], [0], [1], [0, 0, 1, 1], [], []>} : vector<16x32xf32>, vector<32x32xf32>, vector<16x32xf32> -> vector<16x32xf32>
    %49 = vector.broadcast %47 : vector<1x32xf32> to vector<16x32xf32>
    %50 = arith.addf %48, %49 : vector<16x32xf32>
    %cst_37 = arith.constant dense<0.000000e+00> : vector<16x32xf32>
    %51 = tpu.matmul %3, %50, %cst_37 {dimension_numbers = #tpu.dot_dimension_numbers<[1], [0], [0], [1], [0, 0, 1, 1], [], []>} : vector<16x16xf32>, vector<16x32xf32>, vector<16x32xf32> -> vector<16x32xf32>
    %cst_38 = arith.constant 0.000000e+00 : f32
    %52 = vector.broadcast %cst_38 : f32 to vector<16x32xf32>
    %53 = arith.cmpf ogt, %51, %52 : vector<16x32xf32>
    %cst_39 = arith.constant 0.00999999977 : f32
    %54 = vector.broadcast %cst_39 : f32 to vector<16x32xf32>
    %55 = arith.mulf %54, %51 : vector<16x32xf32>
    %56 = arith.select %53, %51, %55 : vector<16x32xi1>, vector<16x32xf32>
    %57 = arith.addf %56, %45 : vector<16x32xf32>
    %c0_40 = arith.constant 0 : index
    %c0_41 = arith.constant 0 : index
    %58 = vector.load %arg14[%c0_40, %c0_41] : memref<32x5xf32, #tpu.memory_space<vmem>>, vector<32x5xf32>
    %cst_42 = arith.constant dense<0.000000e+00> : vector<16x5xf32>
    %59 = tpu.matmul %57, %58, %cst_42 {dimension_numbers = #tpu.dot_dimension_numbers<[1], [0], [0], [1], [0, 0, 1, 1], [], []>} : vector<16x32xf32>, vector<32x5xf32>, vector<16x5xf32> -> vector<16x5xf32>
    %c0_43 = arith.constant 0 : index
    %c0_44 = arith.constant 0 : index
    %60 = vector.load %arg15[%c0_43, %c0_44] : memref<1x5xf32, #tpu.memory_space<vmem>>, vector<1x5xf32>
    %61 = vector.broadcast %60 : vector<1x5xf32> to vector<16x5xf32>
    %62 = arith.addf %59, %61 : vector<16x5xf32>
    %cst_45 = arith.constant 1.000000e+00 : f32
    %63 = vector.broadcast %cst_45 : f32 to vector<16x5xf32>
    %64 = arith.mulf %62, %63 : vector<16x5xf32>
    %65 = vector.extract_strided_slice %64 {offsets = [0, 0], sizes = [16, 1], strides = [1, 1]} : vector<16x5xf32> to vector<16x1xf32>
    %66 = vector.extract_strided_slice %64 {offsets = [0, 1], sizes = [16, 1], strides = [1, 1]} : vector<16x5xf32> to vector<16x1xf32>
    %67 = arith.addf %65, %66 : vector<16x1xf32>
    %68 = vector.extract_strided_slice %64 {offsets = [0, 2], sizes = [16, 1], strides = [1, 1]} : vector<16x5xf32> to vector<16x1xf32>
    %69 = arith.addf %67, %68 : vector<16x1xf32>
    %70 = vector.extract_strided_slice %64 {offsets = [0, 3], sizes = [16, 1], strides = [1, 1]} : vector<16x5xf32> to vector<16x1xf32>
    %71 = arith.addf %69, %70 : vector<16x1xf32>
    %72 = vector.extract_strided_slice %64 {offsets = [0, 4], sizes = [16, 1], strides = [1, 1]} : vector<16x5xf32> to vector<16x1xf32>
    %73 = arith.addf %71, %72 : vector<16x1xf32>
    %cst_46 = arith.constant 2.000000e-01 : f32
    %74 = vector.broadcast %cst_46 : f32 to vector<16x1xf32>
    %75 = arith.mulf %73, %74 : vector<16x1xf32>
    %cst_47 = arith.constant 0.000000e+00 : f32
    %76 = vector.broadcast %cst_47 : f32 to vector<16x1xf32>
    %77 = vector.extract_strided_slice %64 {offsets = [0, 0], sizes = [16, 1], strides = [1, 1]} : vector<16x5xf32> to vector<16x1xf32>
    %78 = arith.subf %77, %75 : vector<16x1xf32>
    %79 = arith.mulf %78, %78 : vector<16x1xf32>
    %80 = arith.addf %76, %79 : vector<16x1xf32>
    %81 = vector.extract_strided_slice %64 {offsets = [0, 1], sizes = [16, 1], strides = [1, 1]} : vector<16x5xf32> to vector<16x1xf32>
    %82 = arith.subf %81, %75 : vector<16x1xf32>
    %83 = arith.mulf %82, %82 : vector<16x1xf32>
    %84 = arith.addf %80, %83 : vector<16x1xf32>
    %85 = vector.extract_strided_slice %64 {offsets = [0, 2], sizes = [16, 1], strides = [1, 1]} : vector<16x5xf32> to vector<16x1xf32>
    %86 = arith.subf %85, %75 : vector<16x1xf32>
    %87 = arith.mulf %86, %86 : vector<16x1xf32>
    %88 = arith.addf %84, %87 : vector<16x1xf32>
    %89 = vector.extract_strided_slice %64 {offsets = [0, 3], sizes = [16, 1], strides = [1, 1]} : vector<16x5xf32> to vector<16x1xf32>
    %90 = arith.subf %89, %75 : vector<16x1xf32>
    %91 = arith.mulf %90, %90 : vector<16x1xf32>
    %92 = arith.addf %88, %91 : vector<16x1xf32>
    %93 = vector.extract_strided_slice %64 {offsets = [0, 4], sizes = [16, 1], strides = [1, 1]} : vector<16x5xf32> to vector<16x1xf32>
    %94 = arith.subf %93, %75 : vector<16x1xf32>
    %95 = arith.mulf %94, %94 : vector<16x1xf32>
    %96 = arith.addf %92, %95 : vector<16x1xf32>
    %cst_48 = arith.constant 2.500000e-01 : f32
    %97 = vector.broadcast %cst_48 : f32 to vector<16x1xf32>
    %98 = arith.mulf %96, %97 : vector<16x1xf32>
    %cst_49 = arith.constant 9.99999974E-6 : f32
    %99 = vector.broadcast %cst_49 : f32 to vector<16x1xf32>
    %100 = arith.addf %98, %99 : vector<16x1xf32>
    %101 = math.sqrt %100 : vector<16x1xf32>
    %102 = tpu.concatenate %75, %101 in 1 : vector<16x1xf32>, vector<16x1xf32> -> vector<16x2xf32>
    %c0_50 = arith.constant 0 : index
    %c0_51 = arith.constant 0 : index
    %c0_52 = arith.constant 0 : index
    %103 = vector.load %arg16[%c0_50, %c0_51, %c0_52] : memref<1x16x2xf32, #tpu.memory_space<vmem>>, vector<1x16x2xf32>
    %104 = vector.shape_cast %103 : vector<1x16x2xf32> to vector<16x2xf32>
    %105 = vector.shape_cast %102 : vector<16x2xf32> to vector<1x16x2xf32>
    tpu.vector_store %arg16[%c0_50, %c0_51, %c0_52], %105 {strides = array<i32>} : memref<1x16x2xf32, #tpu.memory_space<vmem>>, vector<1x16x2xf32>,
    return
  }
  func.func @transform_0(%arg0: i32) -> (i32, i32, i32) {
    %c0_i32 = arith.constant 0 : i32
    %c0_i32_0 = arith.constant 0 : i32
    %c0_i32_1 = arith.constant 0 : i32
    return %arg0, %c0_i32, %c0_i32_0 : i32, i32, i32
  }
  func.func @transform_1(%arg0: i32) -> (i32, i32, i32) {
    %c0_i32 = arith.constant 0 : i32
    %c0_i32_0 = arith.constant 0 : i32
    %c0_i32_1 = arith.constant 0 : i32
    return %arg0, %c0_i32, %c0_i32_0 : i32, i32, i32
  }
  func.func @transform_2(%arg0: i32) -> (i32, i32, i32) {
    %c0_i32 = arith.constant 0 : i32
    %c0_i32_0 = arith.constant 0 : i32
    %c0_i32_1 = arith.constant 0 : i32
    return %arg0, %c0_i32, %c0_i32_0 : i32, i32, i32
  }
  func.func @transform_3(%arg0: i32) -> (i32, i32) {
    %c0_i32 = arith.constant 0 : i32
    %c0_i32_0 = arith.constant 0 : i32
    %c0_i32_1 = arith.constant 0 : i32
    return %c0_i32, %c0_i32_0 : i32, i32
  }
  func.func @transform_4(%arg0: i32) -> (i32, i32) {
    %c0_i32 = arith.constant 0 : i32
    %c0_i32_0 = arith.constant 0 : i32
    %c0_i32_1 = arith.constant 0 : i32
    return %c0_i32, %c0_i32_0 : i32, i32
  }
  func.func @transform_5(%arg0: i32) -> (i32, i32) {
    %c0_i32 = arith.constant 0 : i32
    %c0_i32_0 = arith.constant 0 : i32
    %c0_i32_1 = arith.constant 0 : i32
    return %c0_i32, %c0_i32_0 : i32, i32
  }
  func.func @transform_6(%arg0: i32) -> (i32, i32) {
    %c0_i32 = arith.constant 0 : i32
    %c0_i32_0 = arith.constant 0 : i32
    %c0_i32_1 = arith.constant 0 : i32
    return %c0_i32, %c0_i32_0 : i32, i32
  }
  func.func @transform_7(%arg0: i32) -> (i32, i32) {
    %c0_i32 = arith.constant 0 : i32
    %c0_i32_0 = arith.constant 0 : i32
    %c0_i32_1 = arith.constant 0 : i32
    return %c0_i32, %c0_i32_0 : i32, i32
  }
  func.func @transform_8(%arg0: i32) -> (i32, i32) {
    %c0_i32 = arith.constant 0 : i32
    %c0_i32_0 = arith.constant 0 : i32
    %c0_i32_1 = arith.constant 0 : i32
    return %c0_i32, %c0_i32_0 : i32, i32
  }
  func.func @transform_9(%arg0: i32) -> (i32, i32) {
    %c0_i32 = arith.constant 0 : i32
    %c0_i32_0 = arith.constant 0 : i32
    %c0_i32_1 = arith.constant 0 : i32
    return %c0_i32, %c0_i32_0 : i32, i32
  }
  func.func @transform_10(%arg0: i32) -> (i32, i32) {
    %c0_i32 = arith.constant 0 : i32
    %c0_i32_0 = arith.constant 0 : i32
    %c0_i32_1 = arith.constant 0 : i32
    return %c0_i32, %c0_i32_0 : i32, i32
  }
  func.func @transform_11(%arg0: i32) -> (i32, i32) {
    %c0_i32 = arith.constant 0 : i32
    %c0_i32_0 = arith.constant 0 : i32
    %c0_i32_1 = arith.constant 0 : i32
    return %c0_i32, %c0_i32_0 : i32, i32
  }
  func.func @transform_12(%arg0: i32) -> (i32, i32) {
    %c0_i32 = arith.constant 0 : i32
    %c0_i32_0 = arith.constant 0 : i32
    %c0_i32_1 = arith.constant 0 : i32
    return %c0_i32, %c0_i32_0 : i32, i32
  }
  func.func @transform_13(%arg0: i32) -> (i32, i32) {
    %c0_i32 = arith.constant 0 : i32
    %c0_i32_0 = arith.constant 0 : i32
    %c0_i32_1 = arith.constant 0 : i32
    return %c0_i32, %c0_i32_0 : i32, i32
  }
  func.func @transform_14(%arg0: i32) -> (i32, i32) {
    %c0_i32 = arith.constant 0 : i32
    %c0_i32_0 = arith.constant 0 : i32
    %c0_i32_1 = arith.constant 0 : i32
    return %c0_i32, %c0_i32_0 : i32, i32
  }
  func.func @transform_15(%arg0: i32) -> (i32, i32, i32) {
    %c0_i32 = arith.constant 0 : i32
    %c0_i32_0 = arith.constant 0 : i32
    %c0_i32_1 = arith.constant 0 : i32
    return %arg0, %c0_i32, %c0_i32_0 : i32, i32, i32
  }
}

</mosaic_0001>

<bundles_post_ra>
// kernel: tpu_custom_call.1
= control target key start
LH: loop header
LB: loop body
LE: loop exit
PB: predicated region body
PF: predicated region fallthrough
CT: control target
= control target key end

     0   :  { %s1635_s0 = inlined_call_operand.vmem [shape: f32[2,16,16], index: 0, kind: input, shape index: {}]   ;;  %s1636_s1 = inlined_call_operand.vmem [shape: f32[2,16,16], index: 1, kind: input, shape index: {}]   ;;  %s1637_s2 = inlined_call_operand.vmem [shape: f32[2,16,1], index: 2, kind: input, shape index: {}]   ;;  %s1638_s3 = inlined_call_operand.vmem [shape: f32[1,16], index: 3, kind: input, shape index: {}]   ;;  %s1639_s4 = inlined_call_operand.vmem [shape: f32[1,16], index: 4, kind: input, shape index: {}]   ;;  %s1640_s5 = inlined_call_operand.vmem [shape: f32[1,16], index: 5, kind: input, shape index: {}]   ;;  %s1641_s6 = inlined_call_operand.vmem [shape: f32[1,16], index: 6, kind: input, shape index: {}]   ;;  %s1642_s7 = inlined_call_operand.hbm [shape: f32[16,32], index: 7, kind: input, shape index: {}]   ;;  %s1643_s8 = inlined_call_operand.vmem [shape: f32[1,32], index: 8, kind: input, shape index: {}]   ;;  %s1644_s9 = inlined_call_operand.hbm [shape: f32[32,32], index: 9, kind: input, shape index: {}]   ;;  %s1645_s10 = inlined_call_operand.vmem [shape: f32[1,32], index: 10, kind: input, shape index: {}]   ;;  %s1646_s11 = inlined_call_operand.hbm [shape: f32[32,32], index: 11, kind: input, shape index: {}]   ;;  %s1647_s12 = inlined_call_operand.vmem [shape: f32[1,32], index: 12, kind: input, shape index: {}]   ;;  %s1648_s13 = inlined_call_operand.vmem [shape: f32[32,5], index: 13, kind: input, shape index: {}]   ;;  %s1649_s14 = inlined_call_operand.vmem [shape: f32[1,5], index: 14, kind: input, shape index: {}]   ;;  %s1650_s15 = inlined_call_operand.vmem [shape: f32[2,16,2], index: 15, kind: output, shape index: {}]  }
   0x1   :  { %1651 = sst [smem:[#allocation9_spill]] %s1644_s9 }
   0x2   :  { %20 = vsyncpa [#allocation3], 0 }
   0x3   :  { %21 = vsyncpa [#allocation5], 0  ;;  %s1464_s18 = smov 0  }
   0x4 LB: > { %s1470_s19 = sadd.s32 4294967295, %s1368_s18   ;;  %p1161_p0 = scmp.ge.s32.totalorder %s1368_s18, 1  ;;  %s1368_s18 = sphi %s1464_s18, %s27_s18  }
   0x5   : > { %p388_p1 = scmp.lt.s32.totalorder %s1368_s18, 3  ;;  %p1222_p2 = scmp.eq.s32.totalorder %s1470_s19, 0 }
   0x6   : > { %s1652_s9 = sld [smem:[#allocation9_spill]]  ;;  %s411_s26 = sshll.u32 %s1642_s7, 4  ;;  %s412_s26 = int_to_ptr.hbm [resolvable:$true] %s411_s26 }
   0x7   : > { %p1478_p3 = pnand %p1161_p0, %p388_p1  ;;  %s1370_s27 = smov [#allocation4]  }
   0x8   : > { %s430_s28 = sshll.u32 %s1370_s27, 4  ;;  %s1371_s29 = smov [#allocation2]   ;;  %s431_s28 = int_to_ptr.vmem [resolvable:$true] %s430_s28 }
   0x9   : > { %p1212_p4 = pneg %p1478_p3  ;;  %s413_s30 = sshll.u32 %s1371_s29, 4  ;;  %s414_s30 = int_to_ptr.vmem [resolvable:$true] %s413_s30 }
   0xa   : > { %s445_s20 = sshll.u32 %s1646_s11, 4  ;;  %s1372_s21 = smov 128   ;;  %s446_s20 = int_to_ptr.hbm [resolvable:$true] %s445_s20 }
   0xb   : > { %p1213_p5 = pnand %p1222_p2, %p1212_p4  ;;  %s1374_s24 = smov [#allocation6]  }
   0xc   : > { %s428_s22 = sshll.u32 %s1652_s9, 4  ;;  %s1373_s9 = smov 8   ;;  %s429_s22 = int_to_ptr.hbm [resolvable:$true] %s428_s22 }
   0xd   : > { %1218 = dma.hbm_to_vmem [thread:$0]  (!%p1213_p5), %s429_s22, 512, %s431_s28, [#allocation5], %s1372_s21, %s1372_s21, %s1373_s9  }
   0xe   : > { %1215 = dma.hbm_to_vmem [thread:$0]  (!%p1213_p5), %s412_s26, 256, %s414_s30, [#allocation3], %s1372_s21, %s1372_s21, %s1373_s9  }
   0xf   : > { %s447_s25 = sshll.u32 %s1374_s24, 4  ;;  %496 = sbr.rel (%p1478_p3) target bundleno = 1618 (0x652), region = 80  ;;  %s448_s25 = int_to_ptr.vmem [resolvable:$true] %s447_s25 }
  0x10   : > { %1221 = dma.hbm_to_vmem [thread:$0]  (!%p1213_p5), %s446_s20, 512, %s448_s25, [#allocation5], %s1372_s21, %s1372_s21, %s1373_s9  }
  0x14   : > { %1359 = dma.done.wait (%p1222_p2), [#allocation3], 256  }
  0x15   : > { %1361 = vsyncadd (%p1222_p2), [#allocation3], 4294967040 }
  0x16   : > { %1363 = dma.done.wait (%p1222_p2), [#allocation5], 1024  }
  0x17   : > { %1365 = vsyncadd (%p1222_p2), [#allocation5], 4294966272  ;;  %p565_p6 = scmp.lt.s32.totalorder %s1470_s19, 1  ;;  %v1375_v0 = vmov 0   ;;  %v639_v2 = vld [vmem:[#allocation2 + $0x8] sm:$0xff]  ;;  %v638_v9 = vld [vmem:[#allocation2] sm:$0xff] }
  0x18   : > { %1250 = vset.pattern.permute.xlu0 %v1375_v0  ;;  %1198 = vmatpush.msra.mxu2 %v639_v2  ;;  %v591_v4 = vld [vmem:[%s1641_s6] sm:$0x1]  ;;  %vm644_vm3 = vcmask 130048   ;;  %v712_v32 = vld [vmem:[#allocation4 + $0x18] sm:$0xff]  ;;  %v710_v41 = vld [vmem:[#allocation4 + $0x8] sm:$0xff]  ;;  %vm717_vm5 = vcmask 261120  }
  0x19   : > { %s1655_s19 = smov (!%p565_p6, %s1470_s19), 1  ;;  %665 = vmatpush.msra.mxu0 %v639_v2  ;;  %v592_v5 = vadd.f32 1e-05, %v591_v4  ;;  %v1251_v13 = vld [vmem:[%s1640_s5] ss:$0 sm:$0xff]  ;;  %v709_v42 = vld [vmem:[#allocation4] sm:$0xff] }
  0x1a   : > { %s1504_s9 = sshll.u32 %s1655_s19, 4  ;;  %1199 = vmatpush.msra.mxu2 %v638_v9  ;;  %v1252_v18 = vld [vmem:[%s1638_s3] ss:$0 sm:$0xff]  ;;  %v781_v49 = vld [vmem:[#allocation6 + $0x18] sm:$0xff]  ;;  %v779_v56 = vld [vmem:[#allocation6 + $0x8] sm:$0xff]  ;;  %s1376_s19 = smov 125  }
  0x1b   : > { %s579_s26 = scalar_lea.vmem %s1637_s2, %s1504_s9  ;;  %1258 = vrsqrt.f32 %v592_v5  ;;  %666 = vmatpush.msra.mxu0 %v638_v9  ;;  %vm599_vm0 = vweird.f32 %v592_v5  ;;  %s569_s30 = scalar_lea.vmem %s1635_s0, %s1504_s9  ;;  %v1253_v21 = vld [vmem:[%s1639_s4] ss:$0 sm:$0xff]  ;;  %v778_v57 = vld [vmem:[#allocation6] sm:$0xff]  ;;  %v849_v2 = vld [vmem:[%s1648_s13 + $0x18] sm:$0xff]  ;;  %vm1043_vm15 = vcmask 7168  }
  0x1c   : > { %v590_v1 = vld [vmem:[%s579_s26 + $0x8] sm:$0xff]  ;;  %v589_v3 = vld [vmem:[%s579_s26] sm:$0xff]  ;;  %736 = vmatpush.msrb.mxu2 %v712_v32  ;;  %s574_s28 = scalar_lea.vmem %s1636_s1, %s1504_s9  ;;  %s1377_s29 = smov 126  }
  0x1d   : > { %633 = vperm.xlu0 %1250, %v590_v1   ;;  %v586_v15 = vld [vmem:[%s569_s30 + $0x8] sm:$0xff]  ;;  %v585_v20 = vld [vmem:[%s569_s30] sm:$0xff]  ;;  %804 = vmatpush.msrb.mxu0 %v781_v49  ;;  %s1378_s30 = smov 127   ;;  %s1379_s16 = smov 124  }
  0x1e   : > { %v608_v17 = vsub.f32 %v586_v15, %v1251_v13  ;;  %v607_v23 = vsub.f32 %v585_v20, %v1251_v13  ;;  %v711_v33 = vld [vmem:[#allocation4 + $0x10] sm:$0xff]  ;;  %v588_v40 = vld [vmem:[%s574_s28 + $0x8] sm:$0xff]  ;;  %s1380_s17 = smov 3   ;;  %s1381_s20 = smov 2  }
  0x1f   : > { %737 = vmatpush.msrb.mxu2 %v711_v33  ;;  %v1254_v34 = vld [vmem:[%s1643_s8] ss:$0 sm:$0xff]  ;;  %v847_v9 = vld [vmem:[%s1648_s13 + $0x8] sm:$0xff]  ;;  %s1382_s21 = smov 1   ;;  %s1383_s24 = smov 4  }
  0x20   : > { %v587_v39 = vld [vmem:[%s574_s28] sm:$0xff]  ;;  %s584_s23 = scalar_lea.vmem %s1650_s15, %s1504_s9 }
  0x21   : > { %v1259_v6 = vpop.eup %1258  ;;  %738 = vmatpush.msrb.mxu2 %v710_v41  ;;  %v1255_v51 = vld [vmem:[%s1645_s10] ss:$0 sm:$0xff] }
  0x22   : > { %v594_v7 = vmul.f32 %v1259_v6, %v592_v5  ;;  %vm600_vm1 = vweird.f32 %v1259_v6  ;;  %v780_v55 = vld [vmem:[#allocation6 + $0x10] sm:$0xff] }
  0x23   : > { %vm601_vm2 = vmor %vm599_vm0, %vm600_vm1  ;;  %739 = vmatpush.msrb.mxu2 %v709_v42  ;;  %805 = vmatpush.msrb.mxu0 %v780_v55  ;;  %v1256_v4 = vld [vmem:[%s1647_s12] ss:$0 sm:$0xff]  ;;  %vm1046_vm0 = vcmask 15360  }
  0x24   : > { %v595_v8 = vmul.f32 %v1259_v6, %v594_v7 }
  0x25   : > { %628 = vperm.xlu0 %1250, %v589_v3   ;;  %806 = vmatpush.msrb.mxu0 %v779_v56 }
  0x26   : > { %v596_v10 = vmul.f32 0.5, %v595_v8  ;;  %v848_v8 = vld [vmem:[%s1648_s13 + $0x10] sm:$0xff] }
  0x27   : > { %807 = vmatpush.msrb.mxu0 %v778_v57 }
  0x28   : > { %v597_v11 = vsub.f32 1.5, %v596_v10  ;;  %v846_v10 = vld [vmem:[%s1648_s13] sm:$0xff] }
  0x2a   : > { %v598_v12 = vmul.f32 %v1259_v6, %v597_v11 }
  0x2c   : > { %v602_v14 = vsel %vm601_vm2, %v1259_v6, %v598_v12 }
  0x2d   : > { %v610_v16 = vperm.slane %v602_v14, 0 }
  0x2f   : > { %v613_v19 = vmul.f32 %v610_v16, %v608_v17  ;;  %v612_v25 = vmul.f32 %v610_v16, %v607_v23 }
  0x31   : > { %v619_v22 = vmul.f32 %v1252_v18, %v613_v19  ;;  %v618_v28 = vmul.f32 %v1252_v18, %v612_v25  ;;  %v1257_v19 = vld [vmem:[%s1649_s14] ss:$0 sm:$0xff] }
  0x33   : > { %v625_v24 = vadd.f32 %v1253_v21, %v619_v22  ;;  %v624_v29 = vadd.f32 %v1253_v21, %v618_v28 }
  0x8f   : > { %v634_v26 = vpop.permute.xlu0 %633 }
  0x90   : > { %v637_v27 = vmul.f32 %v634_v26, %v625_v24 }
  0x92   : > { %1179 = vmatmul.msk.f32.vlgmr.msra.gmra.mxu2 %vm644_vm3, %v637_v27 }
  0x97   : > { %v629_v30 = vpop.permute.xlu0 %628 }
  0x98   : > { %v636_v31 = vmul.f32 %v629_v30, %v624_v29 }
  0x9a   : > { %1178 = vmatmul.msk.f32.vlgmr.msra.gmra.mxu0 %vm644_vm3, %v636_v31 }
 0x115   : > { %v671_v35 = vpop.f32.mrf.mxu2 }
 0x116   : > { %v672_v36 = vadd.f32 %v1254_v34, %v671_v35 }
 0x117   : > { %v668_v37 = vpop.f32.mrf.mxu0 }
 0x118   : > { %v669_v38 = vadd.f32 %v1254_v34, %v668_v37  ;;  %694 = vmatpush.msra.mxu1 %v672_v36 }
 0x11a   : > { %695 = vmatpush.msra.mxu1 %v669_v38 }
 0x11b   : > { %1180 = vmatmul.msk.f32.vlgmr.msra.gmra.mxu1 %vm644_vm3, %v587_v39 }
 0x123   : > { %1181 = vmatmul.msk.f32.gmra.mxu1 %vm644_vm3, %v588_v40 }
 0x198   : > { %v697_v43 = vpop.f32.mrf.mxu1 }
 0x199   : > { %vm703_vm4 = vcmp.gt.f32.partialorder %v697_v43, 0.0  ;;  %v705_v44 = vmul.f32 0.01, %v697_v43 }
 0x19b   : > { %v707_v45 = vsel %vm703_vm4, %v697_v43, %v705_v44 }
 0x19c   : > { %1182 = vmatmul.msk.f32.vlgmr.msrb.gmra.mxu2 %vm717_vm5, %v707_v45 }
 0x1a0   : > { %v700_v46 = vpop.f32.mrf.mxu1 }
 0x1a1   : > { %vm704_vm6 = vcmp.gt.f32.partialorder %v700_v46, 0.0  ;;  %v706_v47 = vmul.f32 0.01, %v700_v46 }
 0x1a3   : > { %v708_v48 = vsel %vm704_vm6, %v700_v46, %v706_v47 }
 0x1a4   : > { %1183 = vmatmul.msk.f32.gmra.mxu2 %vm717_vm5, %v708_v48 }
 0x21f   : > { %v741_v50 = vpop.f32.mrf.mxu2 }
 0x220   : > { %v742_v54 = vadd.f32 %v1255_v51, %v741_v50 }
 0x227   : > { %v744_v52 = vpop.f32.mrf.mxu2 }
 0x228   : > { %v745_v53 = vadd.f32 %v1255_v51, %v744_v52 }
 0x22a   : > { %761 = vmatpush.msra.mxu3 %v745_v53 }
 0x22c   : > { %762 = vmatpush.msra.mxu3 %v742_v54 }
 0x22d   : > { %1184 = vmatmul.msk.f32.vlgmr.msra.gmra.mxu3 %vm644_vm3, %v587_v39 }
 0x22e   : > { %872 = vmatpush.msrb.mxu3 %v849_v2 }
 0x230   : > { %873 = vmatpush.msrb.mxu3 %v848_v8 }
 0x232   : > { %874 = vmatpush.msrb.mxu3 %v847_v9 }
 0x234   : > { %875 = vmatpush.msrb.mxu3 %v846_v10 }
 0x235   : > { %1185 = vmatmul.msk.f32.gmra.mxu3 %vm644_vm3, %v588_v40 }
 0x2b0   : > { %v764_v58 = vpop.f32.mrf.mxu3 }
 0x2b1   : > { %vm770_vm7 = vcmp.gt.f32.partialorder %v764_v58, 0.0  ;;  %v772_v59 = vmul.f32 0.01, %v764_v58 }
 0x2b3   : > { %v774_v60 = vsel %vm770_vm7, %v764_v58, %v772_v59 }
 0x2b4   : > { %v776_v61 = vadd.f32 %v774_v60, %v707_v45 }
 0x2b6   : > { %1186 = vmatmul.msk.f32.vlgmr.msrb.gmra.mxu0 %vm717_vm5, %v776_v61 }
 0x2b8   : > { %v767_v62 = vpop.f32.mrf.mxu3 }
 0x2b9   : > { %vm771_vm8 = vcmp.gt.f32.partialorder %v767_v62, 0.0  ;;  %v773_v63 = vmul.f32 0.01, %v767_v62 }
 0x2bb   : > { %v775_v0 = vsel %vm771_vm8, %v767_v62, %v773_v63 }
 0x2bc   : > { %v777_v1 = vadd.f32 %v775_v0, %v708_v48 }
 0x2be   : > { %1187 = vmatmul.msk.f32.gmra.mxu0 %vm717_vm5, %v777_v1 }
 0x333   : > { %v809_v3 = vpop.f32.mrf.mxu0 }
 0x334   : > { %v810_v7 = vadd.f32 %v1256_v4, %v809_v3 }
 0x33b   : > { %v812_v5 = vpop.f32.mrf.mxu0 }
 0x33c   : > { %v813_v6 = vadd.f32 %v1256_v4, %v812_v5 }
 0x33e   : > { %829 = vmatpush.msrb.mxu1 %v813_v6 }
 0x340   : > { %830 = vmatpush.msrb.mxu1 %v810_v7 }
 0x341   : > { %1188 = vmatmul.msk.f32.vlgmr.msrb.gmra.mxu1 %vm644_vm3, %v587_v39 }
 0x349   : > { %1189 = vmatmul.msk.f32.gmra.mxu1 %vm644_vm3, %v588_v40 }
 0x3be   : > { %v832_v11 = vpop.f32.mrf.mxu1 }
 0x3bf   : > { %vm838_vm9 = vcmp.gt.f32.partialorder %v832_v11, 0.0  ;;  %v840_v12 = vmul.f32 0.01, %v832_v11 }
 0x3c1   : > { %v842_v13 = vsel %vm838_vm9, %v832_v11, %v840_v12 }
 0x3c2   : > { %v844_v14 = vadd.f32 %v842_v13, %v776_v61 }
 0x3c4   : > { %1190 = vmatmul.msk.f32.vlgmr.msrb.gmra.mxu3 %vm717_vm5, %v844_v14 }
 0x3c6   : > { %v835_v15 = vpop.f32.mrf.mxu1 }
 0x3c7   : > { %vm839_vm10 = vcmp.gt.f32.partialorder %v835_v15, 0.0  ;;  %v841_v16 = vmul.f32 0.01, %v835_v15 }
 0x3c9   : > { %v843_v17 = vsel %vm839_vm10, %v835_v15, %v841_v16 }
 0x3ca   : > { %v845_v18 = vadd.f32 %v843_v17, %v777_v1 }
 0x3cc   : > { %1191 = vmatmul.msk.f32.gmra.mxu3 %vm717_vm5, %v845_v18 }
 0x447   : > { %v877_v20 = vpop.f32.mrf.mxu3 }
 0x448   : > { %v1568_v21 = vadd.f32 %v1257_v19, %v877_v20 }
 0x44a   : > { %901 = vrot.lane.b32.xlu0 %v1568_v21, %s1376_s19  ;;  %893 = vrot.lane.b32.xlu2 %v1568_v21, %s1377_s29 }
 0x44b   : > { %885 = vrot.lane.b32.xlu1 %v1568_v21, %s1378_s30 }
 0x44f   : > { %v880_v22 = vpop.f32.mrf.mxu3 }
 0x450   : > { %v1576_v23 = vadd.f32 %v1257_v19, %v880_v22 }
 0x452   : > { %911 = vrot.lane.b32.xlu0 %v1576_v23, %s1379_s16  ;;  %895 = vrot.lane.b32.xlu2 %v1576_v23, %s1377_s29 }
 0x453   : > { %887 = vrot.lane.b32.xlu1 %v1576_v23, %s1378_s30 }
 0x45a   : > { %909 = vrot.lane.b32.xlu2 %v1568_v21, %s1379_s16 }
 0x45b   : > { %903 = vrot.lane.b32.xlu1 %v1576_v23, %s1376_s19 }
 0x4a4   : > { %v894_v24 = vpop.permute.xlu2 %893 }
 0x4ac   : > { %v896_v25 = vpop.permute.xlu2 %895 }
 0x4b4   : > { %v910_v31 = vpop.permute.xlu2 %909 }
 0x4bc   : > { %v902_v29 = vpop.permute.xlu0 %901 }
 0x4bd   : > { %v886_v26 = vpop.permute.xlu1 %885 }
 0x4be   : > { %v891_v27 = vadd.f32 %v886_v26, %v1568_v21 }
 0x4c0   : > { %v899_v28 = vadd.f32 %v894_v24, %v891_v27 }
 0x4c2   : > { %v907_v30 = vadd.f32 %v902_v29, %v899_v28 }
 0x4c4   : > { %v915_v32 = vadd.f32 %v910_v31, %v907_v30  ;;  %v912_v39 = vpop.permute.xlu0 %911 }
 0x4c5   : > { %v888_v33 = vpop.permute.xlu1 %887 }
 0x4c6   : > { %v1589_v34 = vmul.f32 0.2, %v915_v32  ;;  %v892_v35 = vadd.f32 %v888_v33, %v1576_v23 }
 0x4c8   : > { %967 = vrot.lane.b32.xlu2 %v1589_v34, %s1380_s17  ;;  %947 = vrot.lane.b32.xlu0 %v1589_v34, %s1381_s20  ;;  %v900_v36 = vadd.f32 %v896_v25, %v892_v35  ;;  %v919_v5 = vsub.f32 %v1568_v21, %v1589_v34 }
 0x4c9   : > { %927 = vrot.lane.b32.xlu1 %v1589_v34, %s1382_s21 }
 0x4ca   : > { %v921_v9 = vmul.f32 %v919_v5, %v919_v5 }
 0x4cd   : > { %v904_v37 = vpop.permute.xlu1 %903 }
 0x4ce   : > { %v908_v38 = vadd.f32 %v904_v37, %v900_v36 }
 0x4d0   : > { %v916_v40 = vadd.f32 %v912_v39, %v908_v38 }
 0x4d2   : > { %v1596_v41 = vmul.f32 0.2, %v916_v40 }
 0x4d4   : > { %969 = vrot.lane.b32.xlu0 %v1596_v41, %s1380_s17  ;;  %949 = vrot.lane.b32.xlu1 %v1596_v41, %s1381_s20  ;;  %v920_v4 = vsub.f32 %v1576_v23, %v1596_v41 }
 0x4d5   : > { %929 = vrot.lane.b32.xlu2 %v1596_v41, %s1382_s21 }
 0x4d6   : > { %v922_v8 = vmul.f32 %v920_v4, %v920_v4 }
 0x4dc   : > { %987 = vrot.lane.b32.xlu1 %v1589_v34, %s1383_s24 }
 0x4dd   : > { %989 = vrot.lane.b32.xlu2 %v1596_v41, %s1383_s24 }
 0x522   : > { %v968_v42 = vpop.permute.xlu2 %967 }
 0x523   : > { %v973_v43 = vsub.f32 %v1568_v21, %v968_v42 }
 0x525   : > { %v975_v44 = vmul.f32 %v973_v43, %v973_v43 }
 0x527   : > { %979 = vrot.lane.b32.xlu1 %v975_v44, %s1376_s19 }
 0x52f   : > { %v930_v45 = vpop.permute.xlu2 %929 }
 0x530   : > { %v934_v46 = vsub.f32 %v1576_v23, %v930_v45 }
 0x532   : > { %v936_v47 = vmul.f32 %v934_v46, %v934_v46 }
 0x534   : > { %941 = vrot.lane.b32.xlu1 %v936_v47, %s1378_s30 }
 0x537   : > { %v990_v48 = vpop.permute.xlu2 %989 }
 0x538   : > { %v994_v49 = vsub.f32 %v1576_v23, %v990_v48 }
 0x53a   : > { %v996_v50 = vmul.f32 %v994_v49, %v994_v49  ;;  %v948_v51 = vpop.permute.xlu0 %947 }
 0x53b   : > { %v953_v52 = vsub.f32 %v1568_v21, %v948_v51  ;;  %v928_v53 = vpop.permute.xlu1 %927 }
 0x53c   : > { %v933_v54 = vsub.f32 %v1568_v21, %v928_v53  ;;  %1001 = vrot.lane.b32.xlu1 %v996_v50, %s1379_s16 }
 0x53d   : > { %v955_v55 = vmul.f32 %v953_v52, %v953_v52 }
 0x53e   : > { %v935_v56 = vmul.f32 %v933_v54, %v933_v54 }
 0x53f   : > { %959 = vrot.lane.b32.xlu2 %v955_v55, %s1377_s29 }
 0x540   : > { %939 = vrot.lane.b32.xlu0 %v935_v56, %s1378_s30 }
 0x546   : > { %v970_v57 = vpop.permute.xlu0 %969  ;;  %v950_v58 = vpop.permute.xlu1 %949 }
 0x547   : > { %v974_v59 = vsub.f32 %v1576_v23, %v970_v57  ;;  %v954_v60 = vsub.f32 %v1576_v23, %v950_v58 }
 0x549   : > { %v976_v61 = vmul.f32 %v974_v59, %v974_v59  ;;  %v956_v62 = vmul.f32 %v954_v60, %v954_v60 }
 0x54b   : > { %981 = vrot.lane.b32.xlu2 %v976_v61, %s1376_s19  ;;  %961 = vrot.lane.b32.xlu0 %v956_v62, %s1377_s29 }
 0x54e   : > { %v988_v63 = vpop.permute.xlu1 %987 }
 0x54f   : > { %v993_v0 = vsub.f32 %v1568_v21, %v988_v63 }
 0x551   : > { %v995_v1 = vmul.f32 %v993_v0, %v993_v0 }
 0x553   : > { %999 = vrot.lane.b32.xlu0 %v995_v1, %s1379_s16 }
 0x599   : > { %v980_v2 = vpop.permute.xlu1 %979  ;;  %v960_v6 = vpop.permute.xlu2 %959 }
 0x5a5   : > { %v982_v14 = vpop.permute.xlu2 %981 }
 0x5a6   : > { %v942_v7 = vpop.permute.xlu1 %941 }
 0x5a7   : > { %v946_v10 = vadd.f32 %v942_v7, %v922_v8 }
 0x5ae   : > { %v1002_v17 = vpop.permute.xlu1 %1001 }
 0x5b2   : > { %v940_v3 = vpop.permute.xlu0 %939 }
 0x5b3   : > { %v945_v11 = vadd.f32 %v940_v3, %v921_v9 }
 0x5b5   : > { %v965_v15 = vadd.f32 %v960_v6, %v945_v11 }
 0x5b7   : > { %v985_v20 = vadd.f32 %v980_v2, %v965_v15 }
 0x5bd   : > { %v962_v12 = vpop.permute.xlu0 %961 }
 0x5be   : > { %v966_v13 = vadd.f32 %v962_v12, %v946_v10 }
 0x5c0   : > { %v986_v16 = vadd.f32 %v982_v14, %v966_v13 }
 0x5c2   : > { %v1006_v18 = vadd.f32 %v1002_v17, %v986_v16 }
 0x5c4   : > { %v1008_v19 = vmul.f32 0.25, %v1006_v18 }
 0x5c5   : > { %v1000_v22 = vpop.permute.xlu0 %999 }
 0x5c6   : > { %v1010_v23 = vadd.f32 1e-05, %v1008_v19  ;;  %v1005_v24 = vadd.f32 %v1000_v22, %v985_v20 }
 0x5c8   : > { %v1007_v25 = vmul.f32 0.25, %v1005_v24  ;;  %1260 = vrsqrt.f32 %v1010_v23  ;;  %vm1030_vm11 = vcmp.eq.f32.partialorder %v1010_v23, inf  ;;  %v1033_v39 = vand.u32 2147483648, %v1010_v23 }
 0x5c9   : > { %vm1032_vm12 = vcmp.eq.f32.partialorder %v1010_v23, 0.0 }
 0x5ca   : > { %v1009_v21 = vadd.f32 1e-05, %v1007_v25 }
 0x5cc   : > { %1262 = vrsqrt.f32 %v1009_v21  ;;  %vm1018_vm13 = vcmp.eq.f32.partialorder %v1009_v21, inf  ;;  %v1021_v45 = vand.u32 2147483648, %v1009_v21  ;;  %vm1020_vm14 = vcmp.eq.f32.partialorder %v1009_v21, 0.0 }
 0x5ce   : > { %v1261_v26 = vpop.eup %1260 }
 0x5cf   : > { %v1024_v27 = vmul.f32 %v1261_v26, %v1010_v23 }
 0x5d1   : > { %v1025_v28 = vmul.f32 %v1261_v26, %v1024_v27 }
 0x5d2   : > { %v1263_v29 = vpop.eup %1262 }
 0x5d3   : > { %v1026_v30 = vmul.f32 0.5, %v1025_v28  ;;  %v1012_v31 = vmul.f32 %v1263_v29, %v1009_v21 }
 0x5d5   : > { %v1027_v32 = vsub.f32 1.5, %v1026_v30  ;;  %v1013_v33 = vmul.f32 %v1263_v29, %v1012_v31 }
 0x5d7   : > { %v1028_v35 = vmul.f32 %v1261_v26, %v1027_v32  ;;  %v1014_v36 = vmul.f32 0.5, %v1013_v33 }
 0x5d9   : > { %v1029_v37 = vmul.f32 %v1028_v35, %v1010_v23  ;;  %v1015_v38 = vsub.f32 1.5, %v1014_v36 }
 0x5db   : > { %v1031_v40 = vsel %vm1030_vm11, %v1010_v23, %v1029_v37  ;;  %v1016_v42 = vmul.f32 %v1263_v29, %v1015_v38 }
 0x5dc   : > { %v1034_v43 = vsel %vm1032_vm12, %v1033_v39, %v1031_v40 }
 0x5dd   : > { %1039 = vrot.lane.b32.xlu0 %v1034_v43, %s1382_s21  ;;  %v1017_v44 = vmul.f32 %v1016_v42, %v1009_v21 }
 0x5df   : > { %v1019_v46 = vsel %vm1018_vm13, %v1009_v21, %v1017_v44 }
 0x5e0   : > { %v1022_v47 = vsel %vm1020_vm14, %v1021_v45, %v1019_v46 }
 0x5e1   : > { %1037 = vrot.lane.b32.xlu2 %v1022_v47, %s1382_s21 }
 0x63b   : > { %v1038_v48 = vpop.permute.xlu2 %1037 }
 0x63c   : > { %v1044_v49 = vsel %vm1043_vm15, %v1589_v34, %v1038_v48 }
 0x63d   : > { %1047 = vst.msk [vmem:[%s584_s23] sm:$0xff] %vm1046_vm0, %v1044_v49 }
 0x64f   : > { %v1040_v50 = vpop.permute.xlu0 %1039 }
 0x650   : > { %v1045_v51 = vsel %vm1043_vm15, %v1596_v41, %v1040_v50 }
 0x651   : > { %1048 = vst.msk [vmem:[%s584_s23 + $0x8] sm:$0xff] %vm1046_vm0, %v1045_v51 }
 0x652 PF: > { %s27_s18 = sadd.s32 1, %s1368_s18  }
 0x653   : > { %p24_p7 = scmp.ge.s32.totalorder %s27_s18, 4  }
 0x655   :  { %26 = sbr.rel (!%p24_p7) target bundleno = 4 (0x4), region = 129 }
 0x65a   :  { %1070 = vsyncpa [#allocation3], 1 }
 0x65b   :  { %1072 = vsyncpa [#allocation3 + $0x1], 1 }
 0x65c   :  { %1073 = vsyncpa [#allocation5], 1 }

</bundles_post_ra>
